<compile_context>
chip_gen: v7x
topology: tpu7x:2x2x1
jax: 0.10.0
libtpu: 0.0.40
codegen_flags: <defaults>
</compile_context>

<pallas_src>
import functools

import jax
import jax.numpy as jnp
from jax.experimental import pallas as pl
from jax.experimental.pallas import tpu as pltpu

LANE = 128     # TPU lane width (last dim)
SUBLANE = 8    # f32 sublane height (second-to-last dim)

PROJ_FIRST = 0   # P = H @ [Wn|Ws]; neigh = A @ P[:,:Dout]; self = P[:Nd, Dout:]
AGG_FIRST = 1    # AH = A @ H;      out = [H_dst | AH] @ [Ws ; Wn]


def _round_up(x, m):
    return (x + m - 1) // m * m


def _pad2d(x, shape):
    return jnp.pad(x, [(0, t - s) for s, t in zip(x.shape, shape)])


# ---------------------------------------------------------------------------
# Fused kernel factory: all SAGEConv layers inside one pallas_call.
# refs = (feat, A_0..A_{L-1}, W_0..W_{L-1}, b_0..b_{L-1}, out)
# ---------------------------------------------------------------------------
def _make_fused_gnn_kernel(num_layers, forms, nd_real):
    def kernel(*refs):
        feat_ref = refs[0]
        a_refs = refs[1:1 + num_layers]
        w_refs = refs[1 + num_layers:1 + 2 * num_layers]
        b_refs = refs[1 + 2 * num_layers:1 + 3 * num_layers]
        o_ref = refs[1 + 3 * num_layers]

        h = feat_ref[...]                           # [Ns0_pad, D0_pad] f32
        for i in range(num_layers):                 # static unroll over layers
            a = a_refs[i][...]                      # [Nd_pad, Ns_pad]
            w = w_refs[i][...]                      # packed per form (below)
            b = b_refs[i][...]                      # [1, Dout_pad]
            nd_pad = a.shape[0]
            dout_pad = b.shape[1]

            if forms[i] == PROJ_FIRST:
                # One fused projection: [Ns, Din] @ [Din, 2*Dout] = [Wn | Ws].
                p = jnp.dot(h, w, preferred_element_type=jnp.float32)
                neigh = jnp.dot(a, p[:, :dout_pad],
                                preferred_element_type=jnp.float32)
                out = p[:nd_pad, dout_pad:] + neigh + b
            else:
                # Aggregate first, then one fused projection with K = 2*Din:
                # [H_dst | A@H] @ [Ws ; Wn].
                ah = jnp.dot(a, h, preferred_element_type=jnp.float32)
                m = jnp.concatenate([h[:nd_pad, :], ah], axis=1)
                out = jnp.dot(m, w, preferred_element_type=jnp.float32) + b

            if i < num_layers - 1:
                out = jnp.maximum(out, 0.0)         # ReLU on all but last layer

            # Zero the padded dst rows so stale src features never leak
            # through the self path into later layers / consumers.
            if nd_real[i] < nd_pad:
                rows = jax.lax.broadcasted_iota(jnp.int32, out.shape, 0)
                out = jnp.where(rows < nd_real[i], out, 0.0)

            h = out

        o_ref[...] = h.astype(o_ref.dtype)          # lane-dense, unmasked store

    return kernel


# ---------------------------------------------------------------------------
# One-time parameter packing (hoisted out of the per-step path).
# ---------------------------------------------------------------------------
def pack_params(params):
    """Pad + pack weights/biases once. Keeps both MXU-friendly packings per
    layer so the per-call wrapper can pick the cheaper matmul order without
    re-padding anything."""
    packed = []
    for (w_neigh, w_self, bias) in params:
        d_in, d_out = w_neigh.shape
        din_p, dout_p = _round_up(d_in, LANE), _round_up(d_out, LANE)
        wn_p = _pad2d(w_neigh, (din_p, dout_p))
        ws_p = _pad2d(w_self, (din_p, dout_p))
        packed.append({
            "w_cat": jnp.concatenate([wn_p, ws_p], axis=1),   # [Din_p, 2*Dout_p]
            "w_stk": jnp.concatenate([ws_p, wn_p], axis=0),   # [2*Din_p, Dout_p]
            "bias": _pad2d(bias.reshape(1, -1), (1, dout_p)),
            "d_in": d_in,
            "d_out": d_out,
        })
    return packed


def _choose_forms(block_shapes, packed_params):
    """Pick the cheaper matmul order per layer from *padded* FLOPs."""
    forms = []
    for (nd, ns), layer in zip(block_shapes, packed_params):
        nd_p, ns_p = _round_up(nd, SUBLANE), _round_up(ns, SUBLANE)
        din_p = _round_up(layer["d_in"], LANE)
        dout_p = _round_up(layer["d_out"], LANE)
        cost_proj = ns_p * din_p * (2 * dout_p) + nd_p * ns_p * dout_p
        cost_agg = nd_p * ns_p * din_p + nd_p * (2 * din_p) * dout_p
        # Tie -> PROJ_FIRST (2*Dout-wide RHS fills the 256-wide v6e/v7x MXU).
        forms.append(PROJ_FIRST if cost_proj <= cost_agg else AGG_FIRST)
    return tuple(forms)


# ---------------------------------------------------------------------------
# Jitted forward: pad data, run one fused pallas_call, strip padding.
# ---------------------------------------------------------------------------
@functools.partial(jax.jit, static_argnames=("forms", "d_out_final"))
def _gnn_forward_jit(blocks, features, weights, biases, *, forms, d_out_final):
    num_layers = len(blocks)
    nd_real = tuple(a.shape[0] for a in blocks)
    ns_real = tuple(a.shape[1] for a in blocks)
    nd_pad = tuple(_round_up(n, SUBLANE) for n in nd_real)
    ns_pad = tuple(_round_up(n, SUBLANE) for n in ns_real)
    din_pad = tuple(w.shape[0] if f == PROJ_FIRST else w.shape[0] // 2
                    for w, f in zip(weights, forms))
    dout_pad = tuple(b.shape[1] for b in biases)

    # Data padding stays inside the jit (fused by XLA, amortized by the cache).
    feat_p = _pad2d(features, (ns_pad[0], din_pad[0]))
    a_p = [_pad2d(a, (nd_pad[i], ns_pad[i])) for i, a in enumerate(blocks)]

    # Static cost estimate so XLA schedules/overlaps the custom call sensibly.
    flops = 0
    for i in range(num_layers):
        if forms[i] == PROJ_FIRST:
            flops += 2 * ns_pad[i] * din_pad[i] * (2 * dout_pad[i])
            flops += 2 * nd_pad[i] * ns_pad[i] * dout_pad[i]
        else:
            flops += 2 * nd_pad[i] * ns_pad[i] * din_pad[i]
            flops += 2 * nd_pad[i] * (2 * din_pad[i]) * dout_pad[i]
    in_elems = (feat_p.size + sum(a.size for a in a_p)
                + sum(w.size for w in weights) + sum(b.size for b in biases))
    out_elems = nd_pad[-1] * dout_pad[-1]
    bytes_accessed = 4 * (in_elems + out_elems)

    # Explicit VMEM budget (v6e default scoped limit is only 32 MiB; v7x has
    # 64 MiB physical) -- keeps the fully-resident fused path viable longer.
    vmem_limit = int(min(64 * 1024 * 1024,
                         max(2 * bytes_accessed + (1 << 20), 8 * 1024 * 1024)))

    vmem = pl.BlockSpec(memory_space=pltpu.MemorySpace.VMEM)
    n_in = 1 + 3 * num_layers
    out_p = pl.pallas_call(
        _make_fused_gnn_kernel(num_layers, forms, nd_real),
        out_shape=jax.ShapeDtypeStruct((nd_pad[-1], dout_pad[-1]), jnp.float32),
        in_specs=[vmem] * n_in,
        out_specs=vmem,
        compiler_params=pltpu.CompilerParams(vmem_limit_bytes=vmem_limit),
        cost_estimate=pl.CostEstimate(flops=flops, transcendentals=0,
                                      bytes_accessed=bytes_accessed),
    )(feat_p, *a_p, *weights, *biases)

    # Strip the padding back off.
    return out_p[:nd_real[-1], :d_out_final]


def gnn_forward(blocks, features, packed_params):
    """blocks:        list of dense mean-aggregation matrices A_i [Nd_i, Ns_i]
                      with Ns_{i+1} == Nd_i and Ns_0 == features.shape[0].
       features:      [Ns_0, input_dim] f32.
       packed_params: output of pack_params()."""
    forms = _choose_forms([a.shape for a in blocks], packed_params)
    weights = tuple(p["w_cat"] if f == PROJ_FIRST else p["w_stk"]
                    for p, f in zip(packed_params, forms))
    biases = tuple(p["bias"] for p in packed_params)
    return _gnn_forward_jit(tuple(blocks), features, weights, biases,
                            forms=forms,
                            d_out_final=packed_params[-1]["d_out"])


# Pure-JAX reference for a sanity check.
def gnn_forward_ref(blocks, features, params):
    h = features
    n_layers = len(params)
    for i, ((w_neigh, w_self, bias), a) in enumerate(zip(params, blocks)):
        n_dst = a.shape[0]
        h_dst = h[:n_dst]
        h = h_dst @ w_self + (a @ h) @ w_neigh + bias
        if i < n_layers - 1:
            h = jnp.maximum(h, 0.0)
    return h


# ---------------------------------------------------------------------------
# Deterministic parameter / graph construction.
# ---------------------------------------------------------------------------
def init_params(key, input_dim, hidden_dim, output_dim, num_layers):
    dims = [input_dim] + [hidden_dim] * (num_layers - 1) + [output_dim]
    params = []
    for i in range(num_layers):
        d_in, d_out = dims[i], dims[i + 1]
        key, k1, k2 = jax.random.split(key, 3)
        scale = 1.0 / jnp.sqrt(jnp.float32(d_in))
        w_neigh = jax.random.uniform(k1, (d_in, d_out), jnp.float32,
                                     -scale, scale)
        w_self = jax.random.uniform(k2, (d_in, d_out), jnp.float32,
                                    -scale, scale)
        bias = jnp.zeros((d_out,), jnp.float32)
        params.append((w_neigh, w_self, bias))
    return params


def make_blocks(key, src_sizes, dst_sizes, p=0.4):
    """Dense row-normalized mean-aggregation matrices (DGL block analogue).
    Destination nodes are a prefix of source nodes, and every dst node keeps
    an edge from its own src copy so in-degree >= 1."""
    blocks = []
    for ns, nd in zip(src_sizes, dst_sizes):
        key, k = jax.random.split(key)
        adj = (jax.random.uniform(k, (nd, ns)) < p).astype(jnp.float32)
        adj = adj.at[jnp.arange(nd), jnp.arange(nd)].set(1.0)
        deg = adj.sum(axis=1, keepdims=True)
        blocks.append(adj / deg)
    return blocks


if __name__ == "__main__":
    input_dim, hidden_dim, output_dim, num_layers = 16, 32, 8, 3

    key = jax.random.PRNGKey(0)
    k_feat, k_graph, k_params = jax.random.split(key, 3)

    # Node counts per block: src of block i+1 == dst of block i.
    src_sizes = [16, 12, 8]
    dst_sizes = [12, 8, 4]

    features = jax.random.normal(k_feat, (src_sizes[0], input_dim),
                                 jnp.float32)
    blocks = make_blocks(k_graph, src_sizes, dst_sizes)
    params = init_params(k_params, input_dim, hidden_dim, output_dim,
                         num_layers)

    # One-time weight packing (hoisted), then the jitted fused forward.
    packed = pack_params(params)
    out = gnn_forward(blocks, features, packed)
    out = jax.block_until_ready(out)

    # Second call hits the jit cache (no re-padding of weights, no retrace).
    out2 = jax.block_until_ready(gnn_forward(blocks, features, packed))

    ref = gnn_forward_ref(blocks, features, params)
    assert out.shape == (dst_sizes[-1], output_dim)
    assert jnp.allclose(out, ref, atol=1e-4, rtol=1e-4)
    assert jnp.allclose(out2, ref, atol=1e-4, rtol=1e-4)

    print("KERNEL_OK")
</pallas_src>

<mosaic_0001>
module attributes {stable_mosaic.version = 11 : i64} {
  func.func @kernel(%arg0: memref<16x128xf32, #tpu.memory_space<vmem>>, %arg1: memref<16x16xf32, #tpu.memory_space<vmem>>, %arg2: memref<8x16xf32, #tpu.memory_space<vmem>>, %arg3: memref<8x8xf32, #tpu.memory_space<vmem>>, %arg4: memref<128x256xf32, #tpu.memory_space<vmem>>, %arg5: memref<256x128xf32, #tpu.memory_space<vmem>>, %arg6: memref<128x256xf32, #tpu.memory_space<vmem>>, %arg7: memref<1x128xf32, #tpu.memory_space<vmem>>, %arg8: memref<1x128xf32, #tpu.memory_space<vmem>>, %arg9: memref<1x128xf32, #tpu.memory_space<vmem>>, %arg10: memref<8x128xf32, #tpu.memory_space<vmem>>) attributes {dimension_semantics = [], scalar_prefetch = 0 : i64, scratch_operands = 0 : i64, tpu.core_type = #tpu.core_type<tc>} {
    %c0 = arith.constant 0 : index
    %c0_0 = arith.constant 0 : index
    %0 = vector.load %arg0[%c0, %c0_0] : memref<16x128xf32, #tpu.memory_space<vmem>>, vector<16x128xf32>
    %c0_1 = arith.constant 0 : index
    %c0_2 = arith.constant 0 : index
    %1 = vector.load %arg1[%c0_1, %c0_2] : memref<16x16xf32, #tpu.memory_space<vmem>>, vector<16x16xf32>
    %c0_3 = arith.constant 0 : index
    %c0_4 = arith.constant 0 : index
    %2 = vector.load %arg4[%c0_3, %c0_4] : memref<128x256xf32, #tpu.memory_space<vmem>>, vector<128x256xf32>
    %c0_5 = arith.constant 0 : index
    %c0_6 = arith.constant 0 : index
    %3 = vector.load %arg7[%c0_5, %c0_6] : memref<1x128xf32, #tpu.memory_space<vmem>>, vector<1x128xf32>
    %cst = arith.constant dense<0.000000e+00> : vector<16x256xf32>
    %4 = tpu.matmul %0, %2, %cst {dimension_numbers = #tpu.dot_dimension_numbers<[1], [0], [0], [1], [0, 0, 1, 1], [], []>} : vector<16x128xf32>, vector<128x256xf32>, vector<16x256xf32> -> vector<16x256xf32>
    %5 = vector.extract_strided_slice %4 {offsets = [0, 0], sizes = [16, 128], strides = [1, 1]} : vector<16x256xf32> to vector<16x128xf32>
    %cst_7 = arith.constant dense<0.000000e+00> : vector<16x128xf32>
    %6 = tpu.matmul %1, %5, %cst_7 {dimension_numbers = #tpu.dot_dimension_numbers<[1], [0], [0], [1], [0, 0, 1, 1], [], []>} : vector<16x16xf32>, vector<16x128xf32>, vector<16x128xf32> -> vector<16x128xf32>
    %7 = vector.extract_strided_slice %4 {offsets = [0, 128], sizes = [16, 128], strides = [1, 1]} : vector<16x256xf32> to vector<16x128xf32>
    %8 = arith.addf %7, %6 : vector<16x128xf32>
    %9 = vector.broadcast %3 : vector<1x128xf32> to vector<16x128xf32>
    %10 = arith.addf %8, %9 : vector<16x128xf32>
    %cst_8 = arith.constant 0.000000e+00 : f32
    %11 = vector.broadcast %cst_8 : f32 to vector<16x128xf32>
    %12 = arith.maximumf %10, %11 : vector<16x128xf32>
    %13 = tpu.iota {dimensions = array<i32: 0>} : vector<16x128xi32>
    %c12_i32 = arith.constant 12 : i32
    %14 = vector.broadcast %c12_i32 : i32 to vector<16x128xi32>
    %15 = arith.cmpi slt, %13, %14 : vector<16x128xi32>
    %cst_9 = arith.constant 0.000000e+00 : f32
    %16 = vector.broadcast %cst_9 : f32 to vector<16x128xf32>
    %17 = arith.select %15, %12, %16 : vector<16x128xi1>, vector<16x128xf32>
    %c0_10 = arith.constant 0 : index
    %c0_11 = arith.constant 0 : index
    %18 = vector.load %arg2[%c0_10, %c0_11] : memref<8x16xf32, #tpu.memory_space<vmem>>, vector<8x16xf32>
    %c0_12 = arith.constant 0 : index
    %c0_13 = arith.constant 0 : index
    %19 = vector.load %arg5[%c0_12, %c0_13] : memref<256x128xf32, #tpu.memory_space<vmem>>, vector<256x128xf32>
    %c0_14 = arith.constant 0 : index
    %c0_15 = arith.constant 0 : index
    %20 = vector.load %arg8[%c0_14, %c0_15] : memref<1x128xf32, #tpu.memory_space<vmem>>, vector<1x128xf32>
    %cst_16 = arith.constant dense<0.000000e+00> : vector<8x128xf32>
    %21 = tpu.matmul %18, %17, %cst_16 {dimension_numbers = #tpu.dot_dimension_numbers<[1], [0], [0], [1], [0, 0, 1, 1], [], []>} : vector<8x16xf32>, vector<16x128xf32>, vector<8x128xf32> -> vector<8x128xf32>
    %22 = vector.extract_strided_slice %17 {offsets = [0, 0], sizes = [8, 128], strides = [1, 1]} : vector<16x128xf32> to vector<8x128xf32>
    %23 = tpu.concatenate %22, %21 in 1 : vector<8x128xf32>, vector<8x128xf32> -> vector<8x256xf32>
    %cst_17 = arith.constant dense<0.000000e+00> : vector<8x128xf32>
    %24 = tpu.matmul %23, %19, %cst_17 {dimension_numbers = #tpu.dot_dimension_numbers<[1], [0], [0], [1], [0, 0, 1, 1], [], []>} : vector<8x256xf32>, vector<256x128xf32>, vector<8x128xf32> -> vector<8x128xf32>
    %25 = vector.broadcast %20 : vector<1x128xf32> to vector<8x128xf32>
    %26 = arith.addf %24, %25 : vector<8x128xf32>
    %cst_18 = arith.constant 0.000000e+00 : f32
    %27 = vector.broadcast %cst_18 : f32 to vector<8x128xf32>
    %28 = arith.maximumf %26, %27 : vector<8x128xf32>
    %c0_19 = arith.constant 0 : index
    %c0_20 = arith.constant 0 : index
    %29 = vector.load %arg3[%c0_19, %c0_20] : memref<8x8xf32, #tpu.memory_space<vmem>>, vector<8x8xf32>
    %c0_21 = arith.constant 0 : index
    %c0_22 = arith.constant 0 : index
    %30 = vector.load %arg6[%c0_21, %c0_22] : memref<128x256xf32, #tpu.memory_space<vmem>>, vector<128x256xf32>
    %c0_23 = arith.constant 0 : index
    %c0_24 = arith.constant 0 : index
    %31 = vector.load %arg9[%c0_23, %c0_24] : memref<1x128xf32, #tpu.memory_space<vmem>>, vector<1x128xf32>
    %cst_25 = arith.constant dense<0.000000e+00> : vector<8x256xf32>
    %32 = tpu.matmul %28, %30, %cst_25 {dimension_numbers = #tpu.dot_dimension_numbers<[1], [0], [0], [1], [0, 0, 1, 1], [], []>} : vector<8x128xf32>, vector<128x256xf32>, vector<8x256xf32> -> vector<8x256xf32>
    %33 = vector.extract_strided_slice %32 {offsets = [0, 0], sizes = [8, 128], strides = [1, 1]} : vector<8x256xf32> to vector<8x128xf32>
    %cst_26 = arith.constant dense<0.000000e+00> : vector<8x128xf32>
    %34 = tpu.matmul %29, %33, %cst_26 {dimension_numbers = #tpu.dot_dimension_numbers<[1], [0], [0], [1], [0, 0, 1, 1], [], []>} : vector<8x8xf32>, vector<8x128xf32>, vector<8x128xf32> -> vector<8x128xf32>
    %35 = vector.extract_strided_slice %32 {offsets = [0, 128], sizes = [8, 128], strides = [1, 1]} : vector<8x256xf32> to vector<8x128xf32>
    %36 = arith.addf %35, %34 : vector<8x128xf32>
    %37 = vector.broadcast %31 : vector<1x128xf32> to vector<8x128xf32>
    %38 = arith.addf %36, %37 : vector<8x128xf32>
    %39 = tpu.iota {dimensions = array<i32: 0>} : vector<8x128xi32>
    %c4_i32 = arith.constant 4 : i32
    %40 = vector.broadcast %c4_i32 : i32 to vector<8x128xi32>
    %41 = arith.cmpi slt, %39, %40 : vector<8x128xi32>
    %cst_27 = arith.constant 0.000000e+00 : f32
    %42 = vector.broadcast %cst_27 : f32 to vector<8x128xf32>
    %43 = arith.select %41, %38, %42 : vector<8x128xi1>, vector<8x128xf32>
    %c0_28 = arith.constant 0 : index
    %c0_29 = arith.constant 0 : index
    %44 = vector.load %arg10[%c0_28, %c0_29] : memref<8x128xf32, #tpu.memory_space<vmem>>, vector<8x128xf32>
    tpu.vector_store %arg10[%c0_28, %c0_29], %43 {strides = array<i32>} : memref<8x128xf32, #tpu.memory_space<vmem>>, vector<8x128xf32>,
    return
  }
}

</mosaic_0001>

<bundles_post_ra>
// kernel: _gnn_forward_jit.1
= control target key start
LH: loop header
LB: loop body
LE: loop exit
PB: predicated region body
PF: predicated region fallthrough
CT: control target
= control target key end

     0   :  { %15 = vsyncpa [#allocation3], 0  ;;  %s1081_s0 = inlined_call_operand.vmem [shape: f32[16,128], index: 0, kind: input, shape index: {}]   ;;  %s1082_s1 = inlined_call_operand.vmem [shape: f32[16,16], index: 1, kind: input, shape index: {}]   ;;  %s1083_s2 = inlined_call_operand.vmem [shape: f32[8,16], index: 2, kind: input, shape index: {}]   ;;  %s1084_s3 = inlined_call_operand.vmem [shape: f32[8,8], index: 3, kind: input, shape index: {}]   ;;  %s1085_s4 = inlined_call_operand.hbm [shape: f32[128,256], index: 4, kind: input, shape index: {}]   ;;  %s1086_s5 = inlined_call_operand.hbm [shape: f32[256,128], index: 5, kind: input, shape index: {}]   ;;  %s1087_s6 = inlined_call_operand.hbm [shape: f32[128,256], index: 6, kind: input, shape index: {}]   ;;  %s1088_s7 = inlined_call_operand.vmem [shape: f32[1,128], index: 7, kind: input, shape index: {}]   ;;  %s1089_s8 = inlined_call_operand.vmem [shape: f32[1,128], index: 8, kind: input, shape index: {}]   ;;  %s1090_s9 = inlined_call_operand.vmem [shape: f32[1,128], index: 9, kind: input, shape index: {}]   ;;  %s1091_s10 = inlined_call_operand.vmem [shape: f32[8,128], index: 10, kind: output, shape index: {}]  }
   0x1   :  { %16 = vsyncpa [#allocation5], 0  ;;  %s927_s13 = smov [#allocation4]   ;;  %s857_s17 = scalar_lea.hbm %s1086_s5, 4096 }
   0x2   :  { %s42_s14 = sshll.u32 %s927_s13, 4  ;;  %p858_p0 = scmp.ne.s32.totalorder %s1086_s5, %s857_s17  ;;  %s43_s14 = int_to_ptr.vmem [resolvable:$true] %s42_s14 }
   0x3   :  { %p861_p1 = scmp.lt.u32.totalorder %s857_s17, %s1086_s5 }
   0x5   :  { %p863_p2 = pnand %p861_p1, %p858_p0 }
   0x7   :  { %866 = shalt.err (!%p863_p2)
}
   0x8   :  { %s867_s22 = scalar_lea.vmem %s43_s14, 4096  ;;  %p872_p4 = scmp.lt.s32.totalorder %s43_s14, %s43_s14 }
   0x9   :  { %p868_p3 = scmp.ne.s32.totalorder %s43_s14, %s867_s22  ;;  %p873_p5 = scmp.lt.s32.totalorder %s867_s22, %s867_s22 }
   0xb   :  { %p874_p6 = por %p873_p5, %p872_p4 }
   0xd   :  { %p875_p7 = pnand %p874_p6, %p868_p3 }
   0xf   :  { %878 = shalt.err (!%p875_p7)
}
  0x10   :  { %s928_s23 = smov 128   ;;  %s929_s24 = smov 8  }
  0x11   :  { %48 = dma.hbm_to_vmem [thread:$0]  %s1086_s5, 4096, %s43_s14, [#allocation5], %s928_s23, %s928_s23, %s929_s24  }
  0x12   :  { %s930_s27 = smov [#allocation2]   ;;  %s879_s11 = scalar_lea.hbm %s1085_s4, 4096 }
  0x13   :  { %s30_s28 = sshll.u32 %s930_s27, 4  ;;  %p880_p8 = scmp.ne.s32.totalorder %s1085_s4, %s879_s11  ;;  %s31_s28 = int_to_ptr.vmem [resolvable:$true] %s30_s28 }
  0x14   :  { %p883_p9 = scmp.lt.u32.totalorder %s879_s11, %s1085_s4 }
  0x16   :  { %p885_p10 = pnand %p883_p9, %p880_p8 }
  0x18   :  { %888 = shalt.err (!%p885_p10)
}
  0x19   :  { %s889_s17 = scalar_lea.vmem %s31_s28, 4096  ;;  %p894_p12 = scmp.lt.s32.totalorder %s31_s28, %s31_s28 }
  0x1a   :  { %p890_p11 = scmp.ne.s32.totalorder %s31_s28, %s889_s17  ;;  %p895_p13 = scmp.lt.s32.totalorder %s889_s17, %s889_s17 }
  0x1c   :  { %p896_p0 = por %p895_p13, %p894_p12 }
  0x1e   :  { %p897_p1 = pnand %p896_p0, %p890_p11 }
  0x20   :  { %900 = shalt.err (!%p897_p1)
}
  0x21   :  { %s931_s5 = smov 256   ;;  %s932_s14 = smov 16  }
  0x22   :  { %36 = dma.hbm_to_vmem [thread:$0]  %s1085_s4, 4096, %s31_s28, [#allocation3], %s931_s5, %s931_s5, %s932_s14  }
  0x23   :  { %s933_s20 = smov [#allocation6]   ;;  %s901_s24 = scalar_lea.hbm %s1087_s6, 4096 }
  0x24   :  { %s54_s21 = sshll.u32 %s933_s20, 4  ;;  %p902_p2 = scmp.ne.s32.totalorder %s1087_s6, %s901_s24  ;;  %s55_s21 = int_to_ptr.vmem [resolvable:$true] %s54_s21 }
  0x25   :  { %p905_p3 = scmp.lt.u32.totalorder %s901_s24, %s1087_s6 }
  0x27   :  { %p907_p4 = pnand %p905_p3, %p902_p2 }
  0x29   :  { %910 = shalt.err (!%p907_p4)
}
  0x2a   :  { %s911_s30 = scalar_lea.vmem %s55_s21, 4096  ;;  %p916_p6 = scmp.lt.s32.totalorder %s55_s21, %s55_s21 }
  0x2b   :  { %p912_p5 = scmp.ne.s32.totalorder %s55_s21, %s911_s30  ;;  %p917_p7 = scmp.lt.s32.totalorder %s911_s30, %s911_s30 }
  0x2d   :  { %p918_p8 = por %p917_p7, %p916_p6 }
  0x2f   :  { %p919_p9 = pnand %p918_p8, %p912_p5 }
  0x31   :  { %922 = shalt.err (!%p919_p9)
}
  0x32   :  { %60 = dma.hbm_to_vmem [thread:$0]  %s1087_s6, 4096, %s55_s21, [#allocation5], %s931_s5, %s931_s5, %s932_s14  }
  0x33   :  { %923 = dma.done.wait [#allocation3], 4096  }
  0x34   :  { %924 = vsyncadd [#allocation3], 4294963200 }
  0x35   :  { %925 = dma.done.wait [#allocation5], 8192  }
  0x36   :  { %926 = vsyncadd [#allocation5], 4294959104  ;;  %v934_v0 = vmov 0.0   ;;  %v81_v1 = vld [vmem:[#allocation2 + $0x8] sm:$0xff]  ;;  %v83_v2 = vld [vmem:[#allocation2 + $0x18] sm:$0xff]  ;;  %vm190_vm0 = vcmask 130048   ;;  %v284_v59 = vlaneseq }
  0x37   :  { %177 = vmatprep.mubr.f32.mxu0 %v934_v0  ;;  %v80_v3 = vld [vmem:[#allocation2] sm:$0xff]  ;;  %v742_v4 = vpack.c.bf16 %v83_v2, %v81_v1  ;;  %v82_v5 = vld [vmem:[#allocation2 + $0x10] sm:$0xff]  ;;  %v85_v6 = vld [vmem:[#allocation2 + $0x28] sm:$0xff]  ;;  %v935_v58 = vmov 0.0|0.0   ;;  %vm936_vm1 = vmmov 0   ;;  %vm937_vm3 = vmmov 1  }
  0x38   :  { %v87_v7 = vld [vmem:[#allocation2 + $0x38] sm:$0xff]  ;;  %v744_v8 = vpack.c.bf16 %v82_v5, %v80_v3  ;;  %v84_v10 = vld [vmem:[#allocation2 + $0x20] sm:$0xff]  ;;  %v86_v11 = vld [vmem:[#allocation2 + $0x30] sm:$0xff]  ;;  %v1048_v60 = vshrl.u32 %v284_v59, 7  ;;  %vm580_vm5 = vcmask 64512  }
  0x39   :  { %v746_v9 = vpack.c.bf16 %v87_v7, %v85_v6  ;;  %v89_v12 = vld [vmem:[#allocation2 + $0x48] sm:$0xff]  ;;  %743 = vmatprep.subr.bf16.mxu0 %v742_v4  ;;  %v91_v13 = vld [vmem:[#allocation2 + $0x58] sm:$0xff]  ;;  %v748_v14 = vpack.c.bf16 %v86_v11, %v84_v10  ;;  %v88_v16 = vld [vmem:[#allocation2 + $0x40] sm:$0xff] }
  0x3a   :  { %745 = vmatpush1.bf16.msra.mxu0 %v744_v8  ;;  %v750_v15 = vpack.c.bf16 %v91_v13, %v89_v12  ;;  %v90_v17 = vld [vmem:[#allocation2 + $0x50] sm:$0xff]  ;;  %v93_v18 = vld [vmem:[#allocation2 + $0x68] sm:$0xff]  ;;  %v95_v19 = vld [vmem:[#allocation2 + $0x78] sm:$0xff]  ;;  %v286_v63 = vadd.s32 8, %v1048_v60  ;;  %vm662_vm6 = vcmp.lt.s32.totalorder %v1048_v60, 4 }
  0x3b   :  { %747 = vmatprep.subr.bf16.mxu0 %v746_v9  ;;  %v752_v20 = vpack.c.bf16 %v90_v17, %v88_v16  ;;  %v754_v21 = vpack.c.bf16 %v95_v19, %v93_v18  ;;  %v92_v22 = vld [vmem:[#allocation2 + $0x60] sm:$0xff]  ;;  %v94_v23 = vld [vmem:[#allocation2 + $0x70] sm:$0xff]  ;;  %v97_v24 = vld [vmem:[#allocation2 + $0x88] sm:$0xff] }
  0x3c   :  { %v99_v25 = vld [vmem:[#allocation2 + $0x98] sm:$0xff]  ;;  %v756_v26 = vpack.c.bf16 %v94_v23, %v92_v22  ;;  %v96_v28 = vld [vmem:[#allocation2 + $0x80] sm:$0xff]  ;;  %v98_v29 = vld [vmem:[#allocation2 + $0x90] sm:$0xff]  ;;  %vm288_vm2 = vcmp.lt.s32.totalorder %v286_v63, 12 }
  0x3d   :  { %v758_v27 = vpack.c.bf16 %v99_v25, %v97_v24  ;;  %v101_v30 = vld [vmem:[#allocation2 + $0xa8] sm:$0xff]  ;;  %v103_v31 = vld [vmem:[#allocation2 + $0xb8] sm:$0xff]  ;;  %v760_v32 = vpack.c.bf16 %v98_v29, %v96_v28  ;;  %v100_v34 = vld [vmem:[#allocation2 + $0xa0] sm:$0xff] }
  0x3e   :  { %749 = vmatpush1.bf16.msra.mxu0 %v748_v14  ;;  %v762_v33 = vpack.c.bf16 %v103_v31, %v101_v30  ;;  %v102_v35 = vld [vmem:[#allocation2 + $0xb0] sm:$0xff]  ;;  %v105_v36 = vld [vmem:[#allocation2 + $0xc8] sm:$0xff]  ;;  %v107_v37 = vld [vmem:[#allocation2 + $0xd8] sm:$0xff] }
  0x3f   :  { %751 = vmatprep.subr.bf16.mxu0 %v750_v15  ;;  %v764_v38 = vpack.c.bf16 %v102_v35, %v100_v34  ;;  %v766_v39 = vpack.c.bf16 %v107_v37, %v105_v36  ;;  %v104_v40 = vld [vmem:[#allocation2 + $0xc0] sm:$0xff]  ;;  %v106_v41 = vld [vmem:[#allocation2 + $0xd0] sm:$0xff]  ;;  %v109_v42 = vld [vmem:[#allocation2 + $0xe8] sm:$0xff] }
  0x40   :  { %v111_v43 = vld [vmem:[#allocation2 + $0xf8] sm:$0xff]  ;;  %v768_v44 = vpack.c.bf16 %v106_v41, %v104_v40  ;;  %v108_v46 = vld [vmem:[#allocation2 + $0xe0] sm:$0xff]  ;;  %v110_v47 = vld [vmem:[#allocation2 + $0xf0] sm:$0xff] }
  0x41   :  { %v770_v45 = vpack.c.bf16 %v111_v43, %v109_v42  ;;  %v772_v48 = vpack.c.bf16 %v110_v47, %v108_v46  ;;  %v76_v49 = vld [vmem:[%s1081_s0] sm:$0xff]  ;;  %v77_v50 = vld [vmem:[%s1081_s0 + $0x8] sm:$0xff]  ;;  %vm780_vm4 = vmpackc.low %vm288_vm2, %vm937_vm3 }
  0x42   :  { %753 = vmatpush1.bf16.msra.mxu0 %v752_v20  ;;  %v78_v51 = vld [vmem:[%s1082_s1] sm:$0xff]  ;;  %v79_v57 = vld [vmem:[%s1082_s1 + $0x8] sm:$0xff]  ;;  %v310_v14 = vld [vmem:[#allocation4 + $0x90] sm:$0xff] }
  0x43   :  { %755 = vmatprep.subr.bf16.mxu0 %v754_v21  ;;  %727 = vmatprep.mubr.msk.f32.mxu1 %vm190_vm0, %v78_v51  ;;  %v673_v61 = vld [vmem:[%s1088_s7] ss:$0 sm:$0xff]  ;;  %v309_v7 = vld [vmem:[#allocation4 + $0x88] sm:$0xff]  ;;  %v311_v15 = vld [vmem:[#allocation4 + $0x98] sm:$0xff] }
  0x44   :  { %v308_v6 = vld [vmem:[#allocation4 + $0x80] sm:$0xff]  ;;  %v293_v12 = vld [vmem:[#allocation4 + $0x8] sm:$0xff]  ;;  %v786_v18 = vpack.c.bf16 %v311_v15, %v310_v14  ;;  %v294_v19 = vld [vmem:[#allocation4 + $0x10] sm:$0xff] }
  0x45   :  { %v782_v10 = vpack.c.bf16 %v309_v7, %v308_v6  ;;  %v292_v11 = vld [vmem:[#allocation4] sm:$0xff]  ;;  %v295_v20 = vld [vmem:[#allocation4 + $0x18] sm:$0xff]  ;;  %v313_v22 = vld [vmem:[#allocation4 + $0xa8] sm:$0xff] }
  0x46   :  { %757 = vmatpush1.bf16.msra.mxu0 %v756_v26  ;;  %v291_v16 = vld [vmem:[%s1083_s2] sm:$0xff]  ;;  %v784_v17 = vpack.c.bf16 %v293_v12, %v292_v11  ;;  %v788_v23 = vpack.c.bf16 %v295_v20, %v294_v19  ;;  %v297_v26 = vld [vmem:[#allocation4 + $0x28] sm:$0xff]  ;;  %v315_v28 = vld [vmem:[#allocation4 + $0xb8] sm:$0xff] }
  0x47   :  { %759 = vmatprep.subr.bf16.mxu0 %v758_v27  ;;  %v312_v21 = vld [vmem:[#allocation4 + $0xa0] sm:$0xff]  ;;  %v314_v27 = vld [vmem:[#allocation4 + $0xb0] sm:$0xff]  ;;  %v317_v34 = vld [vmem:[#allocation4 + $0xc8] sm:$0xff] }
  0x48   :  { %v790_v24 = vpack.c.bf16 %v313_v22, %v312_v21  ;;  %v296_v25 = vld [vmem:[#allocation4 + $0x20] sm:$0xff]  ;;  %v794_v30 = vpack.c.bf16 %v315_v28, %v314_v27  ;;  %v298_v31 = vld [vmem:[#allocation4 + $0x30] sm:$0xff]  ;;  %v319_v40 = vld [vmem:[#allocation4 + $0xd8] sm:$0xff] }
  0x49   :  { %v792_v29 = vpack.c.bf16 %v297_v26, %v296_v25  ;;  %v300_v37 = vld [vmem:[#allocation4 + $0x40] sm:$0xff]  ;;  %v302_v43 = vld [vmem:[#allocation4 + $0x50] sm:$0xff]  ;;  %v321_v46 = vld [vmem:[#allocation4 + $0xe8] sm:$0xff] }
  0x4a   :  { %761 = vmatpush1.bf16.msra.mxu0 %v760_v32  ;;  %v299_v32 = vld [vmem:[#allocation4 + $0x38] sm:$0xff]  ;;  %v322_v51 = vld [vmem:[#allocation4 + $0xf0] sm:$0xff]  ;;  %v480_v6 = vld [vmem:[#allocation6 + $0x20] sm:$0xff] }
  0x4b   :  { %763 = vmatprep.subr.bf16.mxu0 %v762_v33  ;;  %v316_v33 = vld [vmem:[#allocation4 + $0xc0] sm:$0xff]  ;;  %v796_v35 = vpack.c.bf16 %v299_v32, %v298_v31  ;;  %v479_v59 = vld [vmem:[#allocation6 + $0x18] sm:$0xff]  ;;  %v478_v63 = vld [vmem:[#allocation6 + $0x10] sm:$0xff] }
  0x4c   :  { %v798_v36 = vpack.c.bf16 %v317_v34, %v316_v33  ;;  %v482_v7 = vld [vmem:[#allocation6 + $0x30] sm:$0xff]  ;;  %v489_v15 = vld [vmem:[#allocation6 + $0x68] sm:$0xff]  ;;  %v488_v19 = vld [vmem:[#allocation6 + $0x60] sm:$0xff] }
  0x4d   :  { %v820_v11 = vpack.c.bf16 %v482_v7, %v480_v6  ;;  %v486_v14 = vld [vmem:[#allocation6 + $0x50] sm:$0xff]  ;;  %v493_v21 = vld [vmem:[#allocation6 + $0x88] sm:$0xff]  ;;  %v495_v22 = vld [vmem:[#allocation6 + $0x98] sm:$0xff] }
  0x4e   :  { %765 = vmatpush1.bf16.msra.mxu0 %v764_v38  ;;  %v301_v38 = vld [vmem:[#allocation4 + $0x48] sm:$0xff]  ;;  %v490_v20 = vld [vmem:[#allocation6 + $0x70] sm:$0xff]  ;;  %v492_v25 = vld [vmem:[#allocation6 + $0x80] sm:$0xff] }
  0x4f   :  { %767 = vmatprep.subr.bf16.mxu0 %v766_v39  ;;  %v318_v39 = vld [vmem:[#allocation4 + $0xd0] sm:$0xff]  ;;  %v800_v41 = vpack.c.bf16 %v301_v38, %v300_v37  ;;  %v497_v27 = vld [vmem:[#allocation6 + $0xa8] sm:$0xff]  ;;  %v499_v28 = vld [vmem:[#allocation6 + $0xb8] sm:$0xff] }
  0x50   :  { %v802_v42 = vpack.c.bf16 %v319_v40, %v318_v39  ;;  %v494_v26 = vld [vmem:[#allocation6 + $0x90] sm:$0xff]  ;;  %v496_v31 = vld [vmem:[#allocation6 + $0xa0] sm:$0xff]  ;;  %v503_v37 = vld [vmem:[#allocation6 + $0xd8] sm:$0xff] }
  0x51   :  { %v498_v32 = vld [vmem:[#allocation6 + $0xb0] sm:$0xff]  ;;  %v500_v39 = vld [vmem:[#allocation6 + $0xc0] sm:$0xff] }
  0x52   :  { %769 = vmatpush1.bf16.msra.mxu0 %v768_v44  ;;  %v303_v44 = vld [vmem:[#allocation4 + $0x58] sm:$0xff]  ;;  %v836_v33 = vpack.c.bf16 %v498_v32, %v496_v31  ;;  %v502_v40 = vld [vmem:[#allocation6 + $0xd0] sm:$0xff] }
  0x53   :  { %771 = vmatprep.subr.bf16.mxu0 %v770_v45  ;;  %v320_v45 = vld [vmem:[#allocation4 + $0xe0] sm:$0xff]  ;;  %v804_v47 = vpack.c.bf16 %v303_v44, %v302_v43  ;;  %v507_v43 = vld [vmem:[#allocation6 + $0xf8] sm:$0xff] }
  0x56   :  { %773 = vmatpush1.bf16.msra.mxu0 %v772_v48  ;;  %v806_v48 = vpack.c.bf16 %v321_v46, %v320_v45  ;;  %v504_v45 = vld [vmem:[#allocation6 + $0xe0] sm:$0xff]  ;;  %v506_v46 = vld [vmem:[#allocation6 + $0xf0] sm:$0xff] }
  0x59   :  { %178 = vmatmul.mubr.f32.vlgmr.msra.gmra.mrb[0].mxu0 %v76_v49  ;;  %v304_v49 = vld [vmem:[#allocation4 + $0x60] sm:$0xff] }
  0x5a   :  { %183 = vmatprep.mubr.f32.mxu0 %v934_v0 }
  0x5d   :  { %184 = vmatmul.mubr.f32.gmra.mrb[2].mxu0 %v77_v50  ;;  %v305_v50 = vld [vmem:[#allocation4 + $0x68] sm:$0xff] }
  0x5e   :  { %573 = vmatprep.mubr.f32.mxu0 %v934_v0 }
 0x12c   :  { %v179_v52 = vpop.f32.mrb[0].mxu0 }
 0x12d   :  { %v181_v53 = vpop.f32.mrb[1].mxu0 }
 0x130   :  { %v185_v54 = vpop.f32.mrb[2].mxu0 }
 0x131   :  { %v774_v55 = vpack.c.bf16 %v185_v54, %v179_v52  ;;  %v187_v56 = vpop.f32.mrb[3].mxu0  ;;  %v323_v52 = vld [vmem:[#allocation4 + $0xf8] sm:$0xff] }
 0x132   :  { %v810_v54 = vpack.c.bf16 %v323_v52, %v322_v51  ;;  %v475_v51 = vld [vmem:[%s1084_s3] sm:$0xff] }
 0x133   :  { %775 = vmatprep.subr.bf16.mxu1 %v774_v55 }
 0x134   :  { %777 = vmatpush3.bf16.msra.mxu1 %v774_v55  ;;  %v306_v55 = vld [vmem:[#allocation4 + $0x70] sm:$0xff] }
 0x135   :  { %778 = vmatprep.subr.bf16.mxu1 %v935_v58  ;;  %v477_v58 = vld [vmem:[#allocation6 + $0x8] sm:$0xff] }
 0x137   :  { %728 = vmatmul.mubr.msk.f32.vlgmr.msra.gmra.mrb[0].mxu1 %vm190_vm0, %v79_v57 }
 0x138   :  { %734 = vmatprep.mubr.msk.f32.mxu1 %vm936_vm1, %v934_v0 }
 0x20a   :  { %v729_v62 = vpop.f32.mrb[0].mxu1 }
 0x20b   :  { %v273_v1 = vadd.f32 %v729_v62, %v187_v56  ;;  %v263_v2 = vpop.f32.mrb[1].mxu1  ;;  %v307_v56 = vld [vmem:[#allocation4 + $0x78] sm:$0xff]  ;;  %v814_v62 = vpack.c.bf16 %v479_v59, %v477_v58 }
 0x20c   :  { %v272_v3 = vadd.f32 %v263_v2, %v181_v53  ;;  %v808_v53 = vpack.c.bf16 %v305_v50, %v304_v49  ;;  %v812_v57 = vpack.c.bf16 %v307_v56, %v306_v55  ;;  %v483_v2 = vld [vmem:[#allocation6 + $0x38] sm:$0xff] }
 0x20d   :  { %v281_v4 = vadd.f32 %v673_v61, %v273_v1  ;;  %v481_v1 = vld [vmem:[#allocation6 + $0x28] sm:$0xff]  ;;  %815 = vmatprep.subr.bf16.mxu0 %v814_v62 }
 0x20e   :  { %v1054_v5 = vadd.f32 %v673_v61, %v272_v3  ;;  %v476_v61 = vld [vmem:[#allocation6] sm:$0xff] }
 0x20f   :  { %v283_v8 = vmax.f32 %v281_v4, 0.0  ;;  %v816_v3 = vpack.c.bf16 %v478_v63, %v476_v61  ;;  %v818_v4 = vpack.c.bf16 %v483_v2, %v481_v1 }
 0x210   :  { %v282_v9 = vmax.f32 %v1054_v5, 0.0 }
 0x211   :  { %817 = vmatpush1.bf16.msra.mxu0 %v816_v3 }
 0x212   :  { %v779_v13 = vpack.c.bf16 %v283_v8, %v282_v9  ;;  %v485_v8 = vld [vmem:[#allocation6 + $0x48] sm:$0xff]  ;;  %819 = vmatprep.subr.bf16.mxu0 %v818_v4 }
 0x214   :  { %781 = vmatpush3.bf16.msk.msra.mxu1 %vm780_vm4, %v779_v13  ;;  %v484_v13 = vld [vmem:[#allocation6 + $0x40] sm:$0xff] }
 0x215   :  { %783 = vmatprep.subr.bf16.mxu1 %v782_v10  ;;  %v487_v10 = vld [vmem:[#allocation6 + $0x58] sm:$0xff]  ;;  %821 = vmatpush1.bf16.msra.mxu0 %v820_v11 }
 0x216   :  { %v822_v12 = vpack.c.bf16 %v487_v10, %v485_v8 }
 0x217   :  { %735 = vmatmul.mubr.msk.f32.vlgmr.msra.gmra.mrb[2].mxu1 %vm190_vm0, %v291_v16  ;;  %v491_v16 = vld [vmem:[#allocation6 + $0x78] sm:$0xff] }
 0x218   :  { %785 = vmatpush3.bf16.msra.mxu1 %v784_v17  ;;  %v824_v17 = vpack.c.bf16 %v486_v14, %v484_v13  ;;  %823 = vmatprep.subr.bf16.mxu0 %v822_v12 }
 0x219   :  { %787 = vmatprep.subr.bf16.mxu1 %v786_v18  ;;  %v826_v18 = vpack.c.bf16 %v491_v16, %v489_v15 }
 0x21a   :  { %825 = vmatpush1.bf16.msra.mxu0 %v824_v17 }
 0x21b   :  { %827 = vmatprep.subr.bf16.mxu0 %v826_v18 }
 0x21c   :  { %789 = vmatpush3.bf16.msra.mxu1 %v788_v23  ;;  %v828_v23 = vpack.c.bf16 %v490_v20, %v488_v19 }
 0x21d   :  { %791 = vmatprep.subr.bf16.mxu1 %v790_v24  ;;  %v830_v24 = vpack.c.bf16 %v495_v22, %v493_v21 }
 0x21e   :  { %829 = vmatpush1.bf16.msra.mxu0 %v828_v23 }
 0x21f   :  { %831 = vmatprep.subr.bf16.mxu0 %v830_v24 }
 0x220   :  { %793 = vmatpush3.bf16.msra.mxu1 %v792_v29  ;;  %v832_v29 = vpack.c.bf16 %v494_v26, %v492_v25 }
 0x221   :  { %795 = vmatprep.subr.bf16.mxu1 %v794_v30  ;;  %v834_v30 = vpack.c.bf16 %v499_v28, %v497_v27 }
 0x222   :  { %833 = vmatpush1.bf16.msra.mxu0 %v832_v29 }
 0x223   :  { %835 = vmatprep.subr.bf16.mxu0 %v834_v30 }
 0x224   :  { %797 = vmatpush3.bf16.msra.mxu1 %v796_v35 }
 0x225   :  { %799 = vmatprep.subr.bf16.mxu1 %v798_v36  ;;  %v501_v36 = vld [vmem:[#allocation6 + $0xc8] sm:$0xff] }
 0x226   :  { %837 = vmatpush1.bf16.msra.mxu0 %v836_v33  ;;  %v838_v38 = vpack.c.bf16 %v503_v37, %v501_v36 }
 0x228   :  { %801 = vmatpush3.bf16.msra.mxu1 %v800_v41  ;;  %v840_v41 = vpack.c.bf16 %v502_v40, %v500_v39  ;;  %839 = vmatprep.subr.bf16.mxu0 %v838_v38 }
 0x229   :  { %803 = vmatprep.subr.bf16.mxu1 %v802_v42  ;;  %v505_v42 = vld [vmem:[#allocation6 + $0xe8] sm:$0xff] }
 0x22a   :  { %841 = vmatpush1.bf16.msra.mxu0 %v840_v41  ;;  %v842_v44 = vpack.c.bf16 %v507_v43, %v505_v42 }
 0x22c   :  { %805 = vmatpush3.bf16.msra.mxu1 %v804_v47  ;;  %v844_v47 = vpack.c.bf16 %v506_v46, %v504_v45  ;;  %843 = vmatprep.subr.bf16.mxu0 %v842_v44 }
 0x22d   :  { %807 = vmatprep.subr.bf16.mxu1 %v806_v48 }
 0x22e   :  { %845 = vmatpush1.bf16.msra.mxu0 %v844_v47 }
 0x230   :  { %809 = vmatpush3.bf16.msra.mxu1 %v808_v53 }
 0x231   :  { %811 = vmatprep.subr.bf16.mxu1 %v810_v54  ;;  %v678_v54 = vld [vmem:[%s1090_s9] ss:$0 sm:$0xff] }
 0x234   :  { %813 = vmatpush3.bf16.msra.mxu1 %v812_v57 }
 0x235   :  { %737 = vmatprep.subr.mxu1 %v934_v0 }
 0x2ea   :  { %v394_v34 = vpop.f32.mrb[2].mxu1 }
 0x2eb   :  { %v736_v35 = vpop.f32.mrb[3].mxu1  ;;  %468 = vmatprep.mubr.f32.mxu1 %v394_v34 }
 0x2ec   :  { %469 = vmatmul.mubr.f32.vlgmr.msra.gmra.mrb[4].mxu1 %v282_v9 }
 0x2ed   :  { %739 = vmatprep.mubr.msk.f32.mxu1 %vm936_vm1, %v934_v0  ;;  %v676_v0 = vld [vmem:[%s1089_s8] ss:$0 sm:$0xff] }
 0x3bf   :  { %v718_v5 = vpop.f32.mrb[4].mxu1 }
 0x3c0   :  { %v719_v9 = vpop.f32.mrb[5].mxu1 }
 0x3c1   :  { %v720_v48 = vadd.f32 %v719_v9, %v718_v5 }
 0x3c3   :  { %v471_v49 = vadd.f32 %v720_v48, %v676_v0 }
 0x3c5   :  { %v474_v50 = vmax.f32 %v471_v49, 0.0 }
 0x3c7   :  { %574 = vmatmul.mubr.f32.vlgmr.msra.gmra.mrb[4].mxu0 %v474_v50 }
 0x49a   :  { %v575_v52 = vpop.f32.mrb[4].mxu0 }
 0x49b   :  { %v577_v53 = vpop.f32.mrb[5].mxu0  ;;  %738 = vmatpush3.msra.mxu1 %v575_v52 }
 0x49c   :  { %740 = vmatmul.mubr.msk.f32.vlgmr.msra.gmra.mrb[6].mxu1 %vm580_vm5, %v475_v51 }
 0x56f   :  { %v650_v55 = vpop.f32.mrb[6].mxu1 }
 0x570   :  { %v654_v56 = vadd.f32 %v650_v55, %v577_v53  ;;  %v741_v57 = vpop.f32.mrb[7].mxu1 }
 0x572   :  { %v661_v58 = vadd.f32 %v678_v54, %v654_v56 }
 0x574   :  { %v663_v59 = vsel %vm662_vm6, %v661_v58, 0.0 }
 0x575   :  { %664 = vst [vmem:[%s1091_s10] sm:$0xff] %v663_v59 }
 0x576   :  { %669 = vsyncpa [#allocation3], 1 }
 0x577   :  { %670 = vsyncpa [#allocation5], 1 }

</bundles_post_ra>
